<compile_context>
chip_gen: v6e
topology: v6e:2x2x1
jax: 0.10.0
libtpu: 0.0.40
codegen_flags: <defaults>
</compile_context>

<pallas_src>
import functools

import numpy as np
import jax
import jax.numpy as jnp
from jax.experimental import pallas as pl
from jax.experimental.pallas import tpu as pltpu

_LANE = 128      # lane width (last dim granularity)
_SUBLANE = 8     # sublane granularity (second-to-last dim)


def _round_up(x, m):
    return ((x + m - 1) // m) * m


def _lowpass_noise_kernel(x_ref, wt_ref, noise_ref, o_ref):
    # y[m, n] = sum_t x[m, t] * W[n, t]   (wt_ref holds W^T, resident across grid)
    y = jnp.dot(x_ref[...], wt_ref[...], preferred_element_type=jnp.float32)
    o_ref[...] = (y + jnp.float32(0.005) * noise_ref[...]).astype(o_ref.dtype)


@functools.lru_cache(maxsize=16)
def _build_lowpass_wt(T, high_cut_hz, fs=64.0):
    """W^T for the real (T, T) operator equivalent to irfft(mask * rfft(.)).

    Pointwise masking in the rfft domain == circular convolution with
    h = irfft(mask), so W is circulant: W[n, t] = h[(n - t) mod T].
    """
    # TODO(synk): for odd T torch's irfft (default n) returns length T-1; we
    # follow the even-T convention (n=T) which matches the module's usage.
    n_bins = T // 2 + 1
    i_stop = int(np.searchsorted(np.fft.rfftfreq(T, 1.0 / fs), high_cut_hz))
    mask = np.zeros(n_bins, dtype=np.float64)
    mask[: min(i_stop + 1, n_bins)] = 1.0          # torch zeroes bins [i_stop+1:]
    h = np.fft.irfft(mask, n=T)                    # (T,)
    idx = np.arange(T)
    wt = h[(idx[None, :] - idx[:, None]) % T]      # wt[t, n] = W[n, t]
    return wt.astype(np.float32)


@functools.partial(jax.jit, static_argnums=(3,))
def _lowpass_call(xm, wt, noise, tile_m):
    Mp, Tp = xm.shape
    grid = (Mp // tile_m,)

    # Rough VMEM budget: double-buffered x/noise/out tiles + resident W^T.
    vmem_bytes = (
        2 * tile_m * Tp * 2      # x tiles (bf16, double-buffered)
        + Tp * Tp * 2            # resident W^T (bf16)
        + 2 * tile_m * Tp * 4    # noise tiles (f32, double-buffered)
        + 2 * tile_m * Tp * 4    # out tiles (f32, double-buffered)
    )
    vmem_limit = min(max(vmem_bytes + (4 << 20), 32 << 20), 64 << 20)

    return pl.pallas_call(
        _lowpass_noise_kernel,
        out_shape=jax.ShapeDtypeStruct((Mp, Tp), jnp.float32),
        grid=grid,
        in_specs=[
            pl.BlockSpec((tile_m, Tp), lambda i: (i, 0)),   # x rows (pipelined)
            pl.BlockSpec((Tp, Tp), lambda i: (0, 0)),       # W^T (resident)
            pl.BlockSpec((tile_m, Tp), lambda i: (i, 0)),   # noise rows
        ],
        out_specs=pl.BlockSpec((tile_m, Tp), lambda i: (i, 0)),
        compiler_params=pltpu.CompilerParams(
            dimension_semantics=("parallel",),              # v7x: shard rows over 2 TCs
            vmem_limit_bytes=vmem_limit,
        ),
    )(xm, wt, noise)


def remove_high_freq(x, high_cut_hz, key=None, fs=64.0):
    """JAX/Pallas equivalent of RemoveHighFreq(high_cut_hz).forward(x)."""
    B, C, T = x.shape
    M = B * C

    # Pad to lane/sublane-friendly shapes (zero padding is exact for the matmul).
    Tp = _round_up(T, _LANE)
    tile_m = min(256, _round_up(M, _SUBLANE))
    Mp = _round_up(M, tile_m)

    # Host-side cached W^T, padded and cast to bf16 for the MXU.
    wt_np = np.zeros((Tp, Tp), dtype=np.float32)
    wt_np[:T, :T] = _build_lowpass_wt(T, float(high_cut_hz), float(fs))
    wt = jnp.asarray(wt_np, dtype=jnp.bfloat16)

    xm = jnp.zeros((Mp, Tp), dtype=jnp.bfloat16)
    xm = xm.at[:M, :T].set(x.reshape(M, T).astype(jnp.bfloat16))

    # Gaussian noise (statistical match for torch.randn_like * 0.005); generated
    # here because in-kernel TPU PRNG primitives are not portable to interpret
    # mode.  Caller varies `key` per step for train-time augmentation.
    if key is None:
        key = jax.random.PRNGKey(0)
    noise = jnp.zeros((Mp, Tp), dtype=jnp.float32)
    noise = noise.at[:M, :T].set(jax.random.normal(key, (M, T), dtype=jnp.float32))

    out = _lowpass_call(xm, wt, noise, tile_m)
    return out[:M, :T].reshape(B, C, T).astype(x.dtype), 0


if __name__ == "__main__":
    root = jax.random.PRNGKey(0)
    xkey, nkey = jax.random.split(root)

    B, C, T = 2, 4, 16          # (batch, eeg-channels, time)
    high_cut_hz = 20.0
    x = jax.random.normal(xkey, (B, C, T), dtype=jnp.float32)

    y, flag = remove_high_freq(x, high_cut_hz, key=nkey)
    y = jax.block_until_ready(y)

    # Reference: pure-JAX FFT low-pass (no noise).  Tolerance covers the 0.005
    # additive noise plus bf16 projection error.
    i_stop = int(np.searchsorted(np.fft.rfftfreq(T, 1 / 64.0), high_cut_hz))
    xf = jnp.fft.rfft(x, axis=-1)
    xf = xf.at[:, :, i_stop + 1:].set(0.0)
    ref = jnp.fft.irfft(xf, n=T, axis=-1)

    assert y.shape == (B, C, T)
    assert flag == 0
    max_err = float(jnp.max(jnp.abs(y - ref)))
    assert max_err < 0.12, f"low-pass result deviates beyond noise/bf16 floor: {max_err}"

    print("KERNEL_OK")
</pallas_src>

<mosaic_0001>
module attributes {stable_mosaic.version = 11 : i64} {
  func.func @_lowpass_noise_kernel(%arg0: i32, %arg1: memref<8x128xbf16, #tpu.memory_space<vmem>>, %arg2: memref<128x128xbf16, #tpu.memory_space<vmem>>, %arg3: memref<8x128xf32, #tpu.memory_space<vmem>>, %arg4: memref<8x128xf32, #tpu.memory_space<vmem>>) attributes {dimension_semantics = [#tpu.dimension_semantics<parallel>], iteration_bounds = array<i64: 1>, scalar_prefetch = 0 : i64, scratch_operands = 0 : i64, tpu.core_type = #tpu.core_type<tc>, window_params = [{transform_indices = @transform_0, window_bounds = array<i64: 8, 128>}, {pipeline_mode = #tpu.pipeline_mode<synchronous>, transform_indices = @transform_1, window_bounds = array<i64: 128, 128>}, {transform_indices = @transform_2, window_bounds = array<i64: 8, 128>}, {transform_indices = @transform_3, window_bounds = array<i64: 8, 128>}]} {
    %c0 = arith.constant 0 : index
    %c0_0 = arith.constant 0 : index
    %0 = vector.load %arg1[%c0, %c0_0] : memref<8x128xbf16, #tpu.memory_space<vmem>>, vector<8x128xbf16>
    %c0_1 = arith.constant 0 : index
    %c0_2 = arith.constant 0 : index
    %1 = vector.load %arg2[%c0_1, %c0_2] : memref<128x128xbf16, #tpu.memory_space<vmem>>, vector<128x128xbf16>
    %cst = arith.constant dense<0.000000e+00> : vector<8x128xf32>
    %2 = tpu.matmul %0, %1, %cst {dimension_numbers = #tpu.dot_dimension_numbers<[1], [0], [0], [1], [0, 0, 1, 1], [], []>} : vector<8x128xbf16>, vector<128x128xbf16>, vector<8x128xf32> -> vector<8x128xf32>
    %c0_3 = arith.constant 0 : index
    %c0_4 = arith.constant 0 : index
    %3 = vector.load %arg3[%c0_3, %c0_4] : memref<8x128xf32, #tpu.memory_space<vmem>>, vector<8x128xf32>
    %cst_5 = arith.constant 5.000000e-03 : f32
    %4 = vector.broadcast %cst_5 : f32 to vector<8x128xf32>
    %5 = arith.mulf %4, %3 : vector<8x128xf32>
    %6 = arith.addf %2, %5 : vector<8x128xf32>
    %c0_6 = arith.constant 0 : index
    %c0_7 = arith.constant 0 : index
    %7 = vector.load %arg4[%c0_6, %c0_7] : memref<8x128xf32, #tpu.memory_space<vmem>>, vector<8x128xf32>
    tpu.vector_store %arg4[%c0_6, %c0_7], %6 {strides = array<i32>} : memref<8x128xf32, #tpu.memory_space<vmem>>, vector<8x128xf32>,
    return
  }
  func.func @transform_0(%arg0: i32) -> (i32, i32) {
    %c0_i32 = arith.constant 0 : i32
    %c0_i32_0 = arith.constant 0 : i32
    return %arg0, %c0_i32 : i32, i32
  }
  func.func @transform_1(%arg0: i32) -> (i32, i32) {
    %c0_i32 = arith.constant 0 : i32
    %c0_i32_0 = arith.constant 0 : i32
    %c0_i32_1 = arith.constant 0 : i32
    return %c0_i32, %c0_i32_0 : i32, i32
  }
  func.func @transform_2(%arg0: i32) -> (i32, i32) {
    %c0_i32 = arith.constant 0 : i32
    %c0_i32_0 = arith.constant 0 : i32
    return %arg0, %c0_i32 : i32, i32
  }
  func.func @transform_3(%arg0: i32) -> (i32, i32) {
    %c0_i32 = arith.constant 0 : i32
    %c0_i32_0 = arith.constant 0 : i32
    return %arg0, %c0_i32 : i32, i32
  }
}

</mosaic_0001>

<bundles_post_ra>
// kernel: _lowpass_call.1
= control target key start
LH: loop header
LB: loop body
LE: loop exit
PB: predicated region body
PF: predicated region fallthrough
CT: control target
= control target key end

     0   :  { %8 = vsyncpa [#allocation3], 0  ;;  %s356_s0 = inlined_call_operand.hbm [shape: bf16[8,128], index: 0, kind: input, shape index: {}]   ;;  %s357_s1 = inlined_call_operand.hbm [shape: bf16[128,128], index: 1, kind: input, shape index: {}]   ;;  %s358_s2 = inlined_call_operand.hbm [shape: f32[8,128], index: 2, kind: input, shape index: {}]   ;;  %s359_s3 = inlined_call_operand.hbm [shape: f32[8,128], index: 3, kind: output, shape index: {}]  }
   0x1   :  { %9 = vsyncpa [#allocation6], 0 }
   0x2   :  { %10 = vsyncpa [#allocation4], 0  ;;  %s316_s12 = smov [#allocation5]  }
   0x3   :  { %s26_s13 = sshll.u32 %s316_s12, 4  ;;  %s27_s13 = int_to_ptr.vmem [resolvable:$true] %s26_s13 }
   0x4   :  { %s238_s14 = scalar_lea.vmem %s27_s13, 1024  ;;  %p243_p1 = scmp.lt.s32.totalorder %s27_s13, %s27_s13 }
   0x5   :  { %p239_p0 = scmp.ne.s32.totalorder %s27_s13, %s238_s14  ;;  %p244_p2 = scmp.lt.s32.totalorder %s238_s14, %s238_s14 }
   0x7   :  { %p245_p3 = por %p244_p2, %p243_p1 }
   0x9   :  { %p246_p4 = pnand %p245_p3, %p239_p0 }
   0xb   :  { %249 = shalt.err (!%p246_p4)
}
   0xc   :  { %s317_s15 = smov 64   ;;  %s318_s16 = smov 4  }
   0xd   :  { %32 = dma.hbm_to_vmem [thread:$0]  %s357_s1, 1024, %s27_s13, [#allocation6], %s317_s15, %s317_s15, %s318_s16  }
   0xe   :  { %s319_s19 = smov [#allocation2]   ;;  %s320_s21 = smov [#allocation7]  }
   0xf   :  { %s17_s20 = sshll.u32 %s319_s19, 4  ;;  %s39_s22 = sshll.u32 %s320_s21, 4  ;;  %s18_s20 = int_to_ptr.vmem [resolvable:$true] %s17_s20  ;;  %s40_s22 = int_to_ptr.vmem [resolvable:$true] %s39_s22 }
  0x10   :  { %s258_s23 = scalar_lea.vmem %s18_s20, 64  ;;  %p263_p6 = scmp.lt.s32.totalorder %s18_s20, %s18_s20 }
  0x11   :  { %p259_p5 = scmp.ne.s32.totalorder %s18_s20, %s258_s23  ;;  %p264_p7 = scmp.lt.s32.totalorder %s258_s23, %s258_s23 }
  0x13   :  { %p265_p8 = por %p264_p7, %p263_p6 }
  0x15   :  { %p266_p9 = pnand %p265_p8, %p259_p5 }
  0x17   :  { %269 = shalt.err (!%p266_p9)
}
  0x18   :  { %20 = dma.hbm_to_vmem [thread:$0]  %s356_s0, 64, %s18_s20, [#allocation3]  }
  0x19   :  { %s278_s26 = scalar_lea.vmem %s40_s22, 128  ;;  %p283_p11 = scmp.lt.s32.totalorder %s40_s22, %s40_s22 }
  0x1a   :  { %p279_p10 = scmp.ne.s32.totalorder %s40_s22, %s278_s26  ;;  %p284_p12 = scmp.lt.s32.totalorder %s278_s26, %s278_s26 }
  0x1c   :  { %p285_p13 = por %p284_p12, %p283_p11 }
  0x1e   :  { %p286_p0 = pnand %p285_p13, %p279_p10 }
  0x20   :  { %289 = shalt.err (!%p286_p0)
}
  0x21   :  { %42 = dma.hbm_to_vmem [thread:$0]  %s358_s2, 128, %s40_s22, [#allocation6]  }
  0x22   :  { %310 = dma.done.wait [#allocation3], 64  }
  0x23   :  { %311 = vsyncadd [#allocation3], 4294967232 }
  0x24   :  { %312 = dma.done.wait [#allocation6], 1152  }
  0x25   :  { %313 = vsyncadd [#allocation6], 4294966144  ;;  %v321_v0 = vmov 0.0   ;;  %vm322_vm0 = vmmov 0   ;;  %v222_v1 = vld [vmem:[#allocation5 + $0x38] sm:$0xff]   ;;  %v223_v2 = vld [vmem:[#allocation5 + $0x30] sm:$0xff]  }
  0x26   :  { %194 = vmatprep.subr.bf16.mxu0 %v321_v0  ;;  %210 = vmatprep.mubr.msk.bf16.mxu0 %vm322_vm0, %v321_v0  ;;  %v224_v3 = vld [vmem:[#allocation5 + $0x28] sm:$0xff]   ;;  %v225_v4 = vld [vmem:[#allocation5 + $0x20] sm:$0xff]   ;;  %v226_v5 = vld [vmem:[#allocation5 + $0x18] sm:$0xff]   ;;  %s323_s0 = smov [#allocation8]  }
  0x27   :  { %195 = vmatpush3.bf16.msra.mxu0 %v222_v1  ;;  %v227_v6 = vld [vmem:[#allocation5 + $0x10] sm:$0xff]   ;;  %v228_v7 = vld [vmem:[#allocation5 + $0x8] sm:$0xff]   ;;  %v229_v8 = vld [vmem:[#allocation5] sm:$0xff]   ;;  %s167_s2 = sshll.u32 %s323_s0, 4  ;;  %s168_s2 = int_to_ptr.vmem [resolvable:$true] %s167_s2 }
  0x28   :  { %196 = vmatprep.subr.bf16.mxu0 %v321_v0  ;;  %v53_v9 = vld [vmem:[#allocation2] sm:$0xf]  ;;  %v70_v10 = vld [vmem:[#allocation7] sm:$0xff]  ;;  %s290_s28 = scalar_lea.vmem %s168_s2, 128  ;;  %p295_p2 = scmp.lt.s32.totalorder %s168_s2, %s168_s2 }
  0x29   :  { %v71_v11 = vmul.f32 0.005, %v70_v10  ;;  %p291_p1 = scmp.ne.s32.totalorder %s168_s2, %s290_s28  ;;  %p296_p3 = scmp.lt.s32.totalorder %s290_s28, %s290_s28 }
  0x2b   :  { %197 = vmatpush3.bf16.msra.mxu0 %v223_v2  ;;  %p297_p4 = por %p296_p3, %p295_p2 }
  0x2c   :  { %198 = vmatprep.subr.bf16.mxu0 %v321_v0 }
  0x2d   :  { %p298_p5 = pnand %p297_p4, %p291_p1 }
  0x2f   :  { %199 = vmatpush3.bf16.msra.mxu0 %v224_v3 }
  0x30   :  { %200 = vmatprep.subr.bf16.mxu0 %v321_v0 }
  0x33   :  { %201 = vmatpush3.bf16.msra.mxu0 %v225_v4 }
  0x34   :  { %202 = vmatprep.subr.bf16.mxu0 %v321_v0 }
  0x37   :  { %203 = vmatpush3.bf16.msra.mxu0 %v226_v5 }
  0x38   :  { %204 = vmatprep.subr.bf16.mxu0 %v321_v0 }
  0x3b   :  { %205 = vmatpush3.bf16.msra.mxu0 %v227_v6 }
  0x3c   :  { %206 = vmatprep.subr.bf16.mxu0 %v321_v0 }
  0x3f   :  { %207 = vmatpush3.bf16.msra.mxu0 %v228_v7 }
  0x40   :  { %208 = vmatprep.subr.bf16.mxu0 %v321_v0 }
  0x43   :  { %209 = vmatpush3.bf16.msra.mxu0 %v229_v8 }
  0x46   :  { %211 = vmatmul.mubr.bf16.vlgmr.msra.gmra.mxu0 %v53_v9 }
 0x106   :  { %v154_v12 = vpop.f32.mrf.mxu0 }
 0x107   :  { %v155_v13 = vadd.f32 %v154_v12, %v71_v11 }
 0x108   :  { %v212_v14 = vpop.f32.mrf.mxu0 }
 0x109   :  { %160 = vst [vmem:[#allocation8] sm:$0xff] %v155_v13 }
 0x10a   :  { %v157_v15 = vpop.f32.mrf.mxu0 }
 0x10b   :  { %301 = shalt.err (!%p298_p5)
}
 0x10c   :  { %170 = dma.vmem_to_hbm [thread:$0]  %s168_s2, 128, %s359_s3, [#allocation4]   ;;  %v213_v16 = vpop.f32.mrf.mxu0 }
 0x10d   :  { %314 = dma.done.wait [#allocation4], 128  }
 0x10e   :  { %315 = vsyncadd [#allocation4], 4294967168 }
 0x10f   :  { %174 = vsyncpa [#allocation3], 1 }
 0x110   :  { %175 = vsyncpa [#allocation6], 1 }
 0x111   :  { %176 = vsyncpa [#allocation4], 1 }

</bundles_post_ra>
